<compile_context>
chip_gen: v7x
topology: tpu7x:2x2x1
jax: 0.10.0
libtpu: 0.0.40
codegen_flags: <defaults>
</compile_context>

<pallas_src>
import functools
import math
from collections.abc import Sequence

import numpy as np
import jax
import jax.numpy as jnp
from jax.experimental import pallas as pl
from jax.experimental.pallas import tpu as pltpu


# ----------------------------------------------------------------------------
# Pallas kernel: Bp planes per grid step, per-plane separable matmuls.
# ----------------------------------------------------------------------------
def _cast_out(v, dtype):
    dt = jnp.dtype(dtype)
    if dt == jnp.dtype(jnp.bool_):
        return v > 0.5
    if jnp.issubdtype(dt, jnp.integer):
        v = jnp.floor(v + 0.5)          # round-to-nearest for integer outputs
    return v.astype(dt)


def _resize_kernel(bp, width_first, wh_ref, wwT_ref, x_ref, o_ref):
    wh = wh_ref[...]                      # (oh, H)  f32, resident across grid
    wwT = wwT_ref[...]                    # (W, ow)  f32, resident across grid
    for b in range(bp):                   # static unroll over planes in block
        xp = x_ref[b].astype(jnp.float32)                       # (H, W)
        if width_first:
            t = jnp.dot(xp, wwT, preferred_element_type=jnp.float32)   # (H, ow)
            y = jnp.dot(wh, t, preferred_element_type=jnp.float32)     # (oh, ow)
        else:
            t = jnp.dot(wh, xp, preferred_element_type=jnp.float32)    # (oh, W)
            y = jnp.dot(t, wwT, preferred_element_type=jnp.float32)    # (oh, ow)
        o_ref[b] = _cast_out(y, o_ref.dtype)


def _pick_block_planes(P, per_plane_bytes, budget=8 << 20):
    """Largest divisor of P fitting the VMEM budget, preferring >=2 grid steps."""
    cap = max(1, budget // max(per_plane_bytes, 1))
    divs = [d for d in range(1, P + 1) if P % d == 0 and d <= cap]
    multi = [d for d in divs if P // d >= 2]
    return max(multi) if multi else max(divs)


def pallas_resize_planes(x, wh, ww):
    """x: (P, H, W) any dtype.  wh: (oh, H), ww: (ow, W) f32 numpy.
    Returns (P, oh, ow) in x.dtype."""
    P, H, W = map(int, x.shape)
    oh, ow = int(wh.shape[0]), int(ww.shape[0])
    dtype = x.dtype
    item = jnp.dtype(dtype).itemsize

    # rough per-plane VMEM footprint: double-buffered in/out blocks + f32 work
    per_plane = (2 * H * W * item + 2 * oh * ow * item
                 + 4 * (H * W + max(H * ow, oh * W) + oh * ow))
    bp = _pick_block_planes(P, per_plane)
    grid = (P // bp,)

    # matmul order: minimise FLOPs + live intermediate.
    width_first = H * ow * (W + oh) <= oh * W * (H + ow)

    whm = jnp.asarray(np.asarray(wh, np.float32))                     # (oh, H)
    wwT = jnp.asarray(np.ascontiguousarray(np.asarray(ww, np.float32).T))  # (W, ow)

    y = pl.pallas_call(
        functools.partial(_resize_kernel, bp, width_first),
        out_shape=jax.ShapeDtypeStruct((P, oh, ow), dtype),
        grid_spec=pltpu.PrefetchScalarGridSpec(
            num_scalar_prefetch=0,
            grid=grid,
            in_specs=[
                pl.BlockSpec((oh, H), lambda p: (0, 0)),        # Wh (resident)
                pl.BlockSpec((W, ow), lambda p: (0, 0)),        # Ww^T (resident)
                pl.BlockSpec((bp, H, W), lambda p: (p, 0, 0)),  # Bp input planes
            ],
            out_specs=pl.BlockSpec((bp, oh, ow), lambda p: (p, 0, 0)),
        ),
        compiler_params=pltpu.CompilerParams(
            dimension_semantics=("parallel",)),
    )(whm, wwT, x)
    return y


# ----------------------------------------------------------------------------
# Interpolation-matrix construction (host-side numpy glue).
# ----------------------------------------------------------------------------
def _bilinear_matrix(out_size, in_size):
    """PyTorch bilinear, align_corners=False, antialias=False."""
    M = np.zeros((out_size, in_size), dtype=np.float32)
    scale = in_size / out_size
    for o in range(out_size):
        src = max((o + 0.5) * scale - 0.5, 0.0)
        i0 = min(int(math.floor(src)), in_size - 1)
        i1 = min(i0 + 1, in_size - 1)
        lam = src - i0
        M[o, i0] += 1.0 - lam
        M[o, i1] += lam
    return M


def _cubic_conv(t, A=-0.75):
    t = abs(t)
    if t <= 1.0:
        return (A + 2.0) * t ** 3 - (A + 3.0) * t ** 2 + 1.0
    if t < 2.0:
        return A * t ** 3 - 5.0 * A * t ** 2 + 8.0 * A * t - 4.0 * A
    return 0.0


def _bicubic_matrix(out_size, in_size):
    """PyTorch bicubic, align_corners=False, antialias=False (A=-0.75)."""
    M = np.zeros((out_size, in_size), dtype=np.float32)
    scale = in_size / out_size
    for o in range(out_size):
        src = (o + 0.5) * scale - 0.5
        i0 = int(math.floor(src))
        t = src - i0
        for k in range(-1, 3):
            idx = min(max(i0 + k, 0), in_size - 1)
            M[o, idx] += _cubic_conv(k - t)
    return M


def _nearest_matrix(out_size, in_size):
    """PyTorch legacy 'nearest' index rule."""
    M = np.zeros((out_size, in_size), dtype=np.float32)
    scale = in_size / out_size
    for o in range(out_size):
        idx = min(int(math.floor(o * scale)), in_size - 1)
        M[o, idx] = 1.0
    return M


_MATRIX_BUILDERS = {
    "bilinear": _bilinear_matrix,
    "bicubic": _bicubic_matrix,
    "nearest": _nearest_matrix,
}


# ----------------------------------------------------------------------------
# Module wrapper (ResizeMultiMask forward semantics).
# ----------------------------------------------------------------------------
class ResizeMultiMaskPallas:
    def __init__(self, size, interpolation="bilinear", max_size=None,
                 antialias=None):
        if not isinstance(size, (int, Sequence)):
            raise TypeError("Size should be int or sequence. Got {}".format(type(size)))
        if isinstance(size, Sequence) and len(size) not in (1, 2):
            raise ValueError("If size is a sequence, it should have 1 or 2 values")
        self.size = size
        self.max_size = max_size
        self.antialias = antialias
        mode = getattr(interpolation, "value", interpolation)
        mode = str(mode).lower()
        if mode not in _MATRIX_BUILDERS:
            raise ValueError("Only bilinear/bicubic/nearest supported for tensors")
        self.interpolation = mode

    def _output_size(self, H, W):
        size = self.size
        if isinstance(size, int) or (isinstance(size, Sequence) and len(size) == 1):
            s = int(size if isinstance(size, int) else size[0])
            short, long = (H, W) if H <= W else (W, H)
            new_short, new_long = s, int(s * long / short)      # trunc, like torch
            if self.max_size is not None:
                if self.max_size <= s:
                    raise ValueError("max_size must be strictly greater than size")
                if new_long > self.max_size:
                    new_short = int(self.max_size * new_short / new_long)
                    new_long = self.max_size
            return (new_short, new_long) if H <= W else (new_long, new_short)
        return int(size[0]), int(size[1])

    def __call__(self, data):
        # Group entries by (spatial shape, output size, mode, dtype) so each
        # group is a single fused pallas_call (e.g. label + mask).
        groups = {}
        for name, arr in data.items():
            arr = jnp.asarray(arr)
            H, W = int(arr.shape[-2]), int(arr.shape[-1])
            oh, ow = self._output_size(H, W)
            ch = int(arr.shape[-3]) if arr.ndim >= 3 else 1
            mode = self.interpolation if ch == 3 else "nearest"
            key = (H, W, oh, ow, mode, str(arr.dtype))
            groups.setdefault(key, []).append((name, arr.reshape((-1, H, W)), arr.shape))

        out = {}
        for (H, W, oh, ow, mode, _), items in groups.items():
            x = (jnp.concatenate([p for _, p, _ in items], axis=0)
                 if len(items) > 1 else items[0][1])
            wh = _MATRIX_BUILDERS[mode](oh, H)
            ww = _MATRIX_BUILDERS[mode](ow, W)
            y = pallas_resize_planes(x, wh, ww)          # (P, oh, ow), native dtype
            off = 0
            for name, planes, shape in items:
                n = planes.shape[0]
                out[name] = y[off:off + n].reshape(shape[:-2] + (oh, ow))
                off += n
        # preserve original key order
        return {k: out[k] for k in data.keys()}


# ----------------------------------------------------------------------------
if __name__ == "__main__":
    key = jax.random.PRNGKey(0)
    k_img, k_lbl, k_msk, k_img2, k_lbl2 = jax.random.split(key, 5)

    # pure-JAX reference (separable resize) for correctness sanity check
    def ref_resize(x, wh, ww):
        xf = x.astype(jnp.float32)
        t = jnp.einsum("oh,nchw->ncow", jnp.asarray(wh), xf)
        return jnp.einsum("vw,ncow->ncov", jnp.asarray(ww), t)

    # --- test 1: fixed (h, w) size, square input -----------------------------
    N, H, W = 2, 16, 16
    img = jax.random.normal(k_img, (N, 3, H, W), dtype=jnp.float32)          # bilinear
    label = jax.random.randint(k_lbl, (N, 1, H, W), 0, 21, dtype=jnp.int32)  # nearest
    mask = jax.random.randint(k_msk, (N, 1, H, W), 0, 2, dtype=jnp.int32)    # nearest

    transform = ResizeMultiMaskPallas(size=(8, 8))
    out = transform({"img": img, "label": label, "mask": mask})
    jax.block_until_ready(out)

    assert out["img"].shape == (N, 3, 8, 8) and out["img"].dtype == jnp.float32
    assert out["label"].shape == (N, 1, 8, 8) and out["label"].dtype == jnp.int32
    assert out["mask"].shape == (N, 1, 8, 8) and out["mask"].dtype == jnp.int32

    wh_b, ww_b = _bilinear_matrix(8, H), _bilinear_matrix(8, W)
    assert jnp.allclose(out["img"], ref_resize(img, wh_b, ww_b),
                        atol=1e-4, rtol=1e-4)
    wh_n, ww_n = _nearest_matrix(8, H), _nearest_matrix(8, W)
    assert jnp.array_equal(out["label"],
                           ref_resize(label, wh_n, ww_n).astype(jnp.int32))
    assert jnp.array_equal(out["mask"],
                           ref_resize(mask, wh_n, ww_n).astype(jnp.int32))

    # --- test 2: int size (smaller edge matched), rectangular input ----------
    H2, W2 = 16, 24                                   # short edge = H -> oh=8, ow=12
    img2 = jax.random.normal(k_img2, (N, 3, H2, W2), dtype=jnp.float32)
    label2 = jax.random.randint(k_lbl2, (N, 1, H2, W2), 0, 21, dtype=jnp.int32)

    transform2 = ResizeMultiMaskPallas(size=8)
    out2 = transform2({"img": img2, "label": label2})
    jax.block_until_ready(out2)

    assert out2["img"].shape == (N, 3, 8, 12) and out2["img"].dtype == jnp.float32
    assert out2["label"].shape == (N, 1, 8, 12) and out2["label"].dtype == jnp.int32

    wh_b2, ww_b2 = _bilinear_matrix(8, H2), _bilinear_matrix(12, W2)
    assert jnp.allclose(out2["img"], ref_resize(img2, wh_b2, ww_b2),
                        atol=1e-4, rtol=1e-4)
    wh_n2, ww_n2 = _nearest_matrix(8, H2), _nearest_matrix(12, W2)
    assert jnp.array_equal(out2["label"],
                           ref_resize(label2, wh_n2, ww_n2).astype(jnp.int32))

    print("KERNEL_OK")
</pallas_src>

<mosaic_0001>
module attributes {stable_mosaic.version = 11 : i64} {
  func.func @_resize_kernel(%arg0: i32, %arg1: memref<8x16xf32, #tpu.memory_space<vmem>>, %arg2: memref<16x8xf32, #tpu.memory_space<vmem>>, %arg3: memref<3x16x16xf32, #tpu.memory_space<vmem>>, %arg4: memref<3x8x8xf32, #tpu.memory_space<vmem>>) attributes {dimension_semantics = [#tpu.dimension_semantics<parallel>], iteration_bounds = array<i64: 2>, scalar_prefetch = 0 : i64, scratch_operands = 0 : i64, tpu.core_type = #tpu.core_type<tc>, window_params = [{pipeline_mode = #tpu.pipeline_mode<synchronous>, transform_indices = @transform_0, window_bounds = array<i64: 8, 16>}, {pipeline_mode = #tpu.pipeline_mode<synchronous>, transform_indices = @transform_1, window_bounds = array<i64: 16, 8>}, {transform_indices = @transform_2, window_bounds = array<i64: 3, 16, 16>}, {transform_indices = @transform_3, window_bounds = array<i64: 3, 8, 8>}]} {
    %c0 = arith.constant 0 : index
    %c0_0 = arith.constant 0 : index
    %0 = vector.load %arg1[%c0, %c0_0] : memref<8x16xf32, #tpu.memory_space<vmem>>, vector<8x16xf32>
    %c0_1 = arith.constant 0 : index
    %c0_2 = arith.constant 0 : index
    %1 = vector.load %arg2[%c0_1, %c0_2] : memref<16x8xf32, #tpu.memory_space<vmem>>, vector<16x8xf32>
    %c0_3 = arith.constant 0 : index
    %c0_4 = arith.constant 0 : index
    %c0_5 = arith.constant 0 : index
    %2 = vector.load %arg3[%c0_3, %c0_4, %c0_5] : memref<3x16x16xf32, #tpu.memory_space<vmem>>, vector<1x16x16xf32>
    %3 = vector.shape_cast %2 : vector<1x16x16xf32> to vector<16x16xf32>
    %cst = arith.constant dense<0.000000e+00> : vector<16x8xf32>
    %4 = tpu.matmul %3, %1, %cst {dimension_numbers = #tpu.dot_dimension_numbers<[1], [0], [0], [1], [0, 0, 1, 1], [], []>} : vector<16x16xf32>, vector<16x8xf32>, vector<16x8xf32> -> vector<16x8xf32>
    %cst_6 = arith.constant dense<0.000000e+00> : vector<8x8xf32>
    %5 = tpu.matmul %0, %4, %cst_6 {dimension_numbers = #tpu.dot_dimension_numbers<[1], [0], [0], [1], [0, 0, 1, 1], [], []>} : vector<8x16xf32>, vector<16x8xf32>, vector<8x8xf32> -> vector<8x8xf32>
    %c0_7 = arith.constant 0 : index
    %c0_8 = arith.constant 0 : index
    %c0_9 = arith.constant 0 : index
    %6 = vector.load %arg4[%c0_7, %c0_8, %c0_9] : memref<3x8x8xf32, #tpu.memory_space<vmem>>, vector<1x8x8xf32>
    %7 = vector.shape_cast %6 : vector<1x8x8xf32> to vector<8x8xf32>
    %8 = vector.shape_cast %5 : vector<8x8xf32> to vector<1x8x8xf32>
    tpu.vector_store %arg4[%c0_7, %c0_8, %c0_9], %8 {strides = array<i32>} : memref<3x8x8xf32, #tpu.memory_space<vmem>>, vector<1x8x8xf32>,
    %c1 = arith.constant 1 : index
    %c0_10 = arith.constant 0 : index
    %c0_11 = arith.constant 0 : index
    %9 = vector.load %arg3[%c1, %c0_10, %c0_11] : memref<3x16x16xf32, #tpu.memory_space<vmem>>, vector<1x16x16xf32>
    %10 = vector.shape_cast %9 : vector<1x16x16xf32> to vector<16x16xf32>
    %cst_12 = arith.constant dense<0.000000e+00> : vector<16x8xf32>
    %11 = tpu.matmul %10, %1, %cst_12 {dimension_numbers = #tpu.dot_dimension_numbers<[1], [0], [0], [1], [0, 0, 1, 1], [], []>} : vector<16x16xf32>, vector<16x8xf32>, vector<16x8xf32> -> vector<16x8xf32>
    %cst_13 = arith.constant dense<0.000000e+00> : vector<8x8xf32>
    %12 = tpu.matmul %0, %11, %cst_13 {dimension_numbers = #tpu.dot_dimension_numbers<[1], [0], [0], [1], [0, 0, 1, 1], [], []>} : vector<8x16xf32>, vector<16x8xf32>, vector<8x8xf32> -> vector<8x8xf32>
    %c1_14 = arith.constant 1 : index
    %c0_15 = arith.constant 0 : index
    %c0_16 = arith.constant 0 : index
    %13 = vector.load %arg4[%c1_14, %c0_15, %c0_16] : memref<3x8x8xf32, #tpu.memory_space<vmem>>, vector<1x8x8xf32>
    %14 = vector.shape_cast %13 : vector<1x8x8xf32> to vector<8x8xf32>
    %15 = vector.shape_cast %12 : vector<8x8xf32> to vector<1x8x8xf32>
    tpu.vector_store %arg4[%c1_14, %c0_15, %c0_16], %15 {strides = array<i32>} : memref<3x8x8xf32, #tpu.memory_space<vmem>>, vector<1x8x8xf32>,
    %c2 = arith.constant 2 : index
    %c0_17 = arith.constant 0 : index
    %c0_18 = arith.constant 0 : index
    %16 = vector.load %arg3[%c2, %c0_17, %c0_18] : memref<3x16x16xf32, #tpu.memory_space<vmem>>, vector<1x16x16xf32>
    %17 = vector.shape_cast %16 : vector<1x16x16xf32> to vector<16x16xf32>
    %cst_19 = arith.constant dense<0.000000e+00> : vector<16x8xf32>
    %18 = tpu.matmul %17, %1, %cst_19 {dimension_numbers = #tpu.dot_dimension_numbers<[1], [0], [0], [1], [0, 0, 1, 1], [], []>} : vector<16x16xf32>, vector<16x8xf32>, vector<16x8xf32> -> vector<16x8xf32>
    %cst_20 = arith.constant dense<0.000000e+00> : vector<8x8xf32>
    %19 = tpu.matmul %0, %18, %cst_20 {dimension_numbers = #tpu.dot_dimension_numbers<[1], [0], [0], [1], [0, 0, 1, 1], [], []>} : vector<8x16xf32>, vector<16x8xf32>, vector<8x8xf32> -> vector<8x8xf32>
    %c2_21 = arith.constant 2 : index
    %c0_22 = arith.constant 0 : index
    %c0_23 = arith.constant 0 : index
    %20 = vector.load %arg4[%c2_21, %c0_22, %c0_23] : memref<3x8x8xf32, #tpu.memory_space<vmem>>, vector<1x8x8xf32>
    %21 = vector.shape_cast %20 : vector<1x8x8xf32> to vector<8x8xf32>
    %22 = vector.shape_cast %19 : vector<8x8xf32> to vector<1x8x8xf32>
    tpu.vector_store %arg4[%c2_21, %c0_22, %c0_23], %22 {strides = array<i32>} : memref<3x8x8xf32, #tpu.memory_space<vmem>>, vector<1x8x8xf32>,
    return
  }
  func.func @transform_0(%arg0: i32) -> (i32, i32) {
    %c0_i32 = arith.constant 0 : i32
    %c0_i32_0 = arith.constant 0 : i32
    %c0_i32_1 = arith.constant 0 : i32
    return %c0_i32, %c0_i32_0 : i32, i32
  }
  func.func @transform_1(%arg0: i32) -> (i32, i32) {
    %c0_i32 = arith.constant 0 : i32
    %c0_i32_0 = arith.constant 0 : i32
    %c0_i32_1 = arith.constant 0 : i32
    return %c0_i32, %c0_i32_0 : i32, i32
  }
  func.func @transform_2(%arg0: i32) -> (i32, i32, i32) {
    %c0_i32 = arith.constant 0 : i32
    %c0_i32_0 = arith.constant 0 : i32
    %c0_i32_1 = arith.constant 0 : i32
    return %arg0, %c0_i32, %c0_i32_0 : i32, i32, i32
  }
  func.func @transform_3(%arg0: i32) -> (i32, i32, i32) {
    %c0_i32 = arith.constant 0 : i32
    %c0_i32_0 = arith.constant 0 : i32
    %c0_i32_1 = arith.constant 0 : i32
    return %arg0, %c0_i32, %c0_i32_0 : i32, i32, i32
  }
}

</mosaic_0001>

<bundles_post_ra>
// kernel: tpu_custom_call.1
= control target key start
LH: loop header
LB: loop body
LE: loop exit
PB: predicated region body
PF: predicated region fallthrough
CT: control target
= control target key end

     0   :  { %8 = vsyncpa [#allocation3], 0  ;;  %s1226_s0 = inlined_call_operand.vmem [shape: f32[8,16], index: 0, kind: input, shape index: {}]   ;;  %s1227_s1 = inlined_call_operand.vmem [shape: f32[16,8], index: 1, kind: input, shape index: {}]   ;;  %s1228_s2 = inlined_call_operand.hbm [shape: f32[6,16,16], index: 2, kind: input, shape index: {}]   ;;  %s1229_s3 = inlined_call_operand.hbm [shape: f32[6,8,8], index: 3, kind: output, shape index: {}]  }
   0x1   :  { %10 = vsyncpa [#allocation3 + $0x1], 0 }
   0x2   :  { %11 = vsyncpa [#allocation4], 0 }
   0x3   :  { %13 = vsyncpa [#allocation4 + $0x1], 0  ;;  %s1048_s12 = smov 0   ;;  %s1050_s13 = smov 0  }
   0x4   :  { %s1052_s14 = smov 0   ;;  %s1054_s15 = smov 0  }
   0x5 LB: > { %s1069_s16 = sadd.s32 4294967295, %s1017_s15   ;;  %s753_s17 = sadd.s32 4294967294, %s1017_s15   ;;  %s1017_s15 = sphi %s1054_s15, %s1241_s15   ;;  %s1013_s14 = sphi %s1052_s14, %s1240_s14   ;;  %s1009_s13 = sphi %s1050_s13, %s1239_s13   ;;  %s1005_s12 = sphi %s1048_s12, %s1238_s12  }
   0x6   : > { %s1073_s18 = sadd.s32 1, %s1017_s15   ;;  %s68_s19 = sadd.s32 1, %s1013_s14 }
   0x7   : > { %s65_s20 = ssub.s32 %s1017_s15, %s1073_s18  ;;  %p75_p0 = scmp.ne.s32.totalorder %s1013_s14, %s1009_s13 }
   0x8   : > { %p66_p1 = scmp.eq.s32.totalorder %s65_s20, 0  ;;  %p76_p2 = scmp.eq.s32.totalorder %s1017_s15, 0 }
   0x9   : > { %p81_p3 = scmp.ne.s32.totalorder %s1009_s13, %s1005_s12  ;;  %p82_p4 = scmp.eq.s32.totalorder %s1069_s16, 0 }
   0xa   : > { %s1085_s21 = scalar_select %p66_p1, %s1013_s14, %s68_s19  }
   0xb   : > { %p77_p5 = por %p76_p2, %p75_p0  ;;  %p1087_p6 = por %p82_p4, %p81_p3 }
   0xc   : > { %p105_p7 = scmp.eq.s32.totalorder %s1069_s16, 1  ;;  %p111_p8 = scmp.eq.s32.totalorder %s753_s17, 1 }
   0xd   : > { %p880_p10 = scmp.lt.s32.totalorder %s1017_s15, 2  ;;  %s137_s25 = sand.u32 1, %s1013_s14  }
   0xe   : > { %p1094_p11 = por %p105_p7, %p75_p0  ;;  %p1098_p12 = por %p111_p8, %p81_p3 }
   0xf   : > { %s780_s26 = smul.u32 768, %s1017_s15  ;;  %p1109_p13 = pnand %p880_p10, %p77_p5 }
  0x10   : > { %s1232_s23 = scalar_select %p1094_p11, 1, 0 }
  0x11   : > { %s1233_s24 = scalar_select %p1098_p12, 1, 0 }
  0x12   : > { %s865_s27 = smul.u32 48, %s137_s25  ;;  %s1107_s30 = scalar_lea.hbm %s1228_s2, %s780_s26 }
  0x13   : > { %s1115_s7 = scalar_lea.sflag [#allocation3], %s137_s25  ;;  %s921_s8 = scalar_lea.hbm %s1107_s30, 768 }
  0x14   : > { %s141_s5 = scalar_lea.vmem [#allocation2], %s865_s27  ;;  %p922_p0 = scmp.ne.s32.totalorder %s1107_s30, %s921_s8 }
  0x15   : > { %s149_s6 = sshll.u32 %s141_s5, 4  ;;  %p923_p1 = pneg %p1109_p13  ;;  %s1113_s6 = int_to_ptr.vmem [resolvable:$true] %s149_s6 }
  0x16   : > { %s926_s11 = scalar_lea.hbm %s1228_s2, 1536  ;;  %p927_p4 = scmp.lt.u32.totalorder %s1107_s30, %s1228_s2 }
  0x17   : > { %p924_p2 = pnand %p923_p1, %p922_p0  ;;  %p928_p5 = scmp.lt.u32.totalorder %s926_s11, %s921_s8 }
  0x18   : > { %p930_p8 = scmp.lt.u32.totalorder %s921_s8, %s1107_s30 }
  0x19   : > { %p925_p3 = pneg %p924_p2  ;;  %p929_p7 = por %p928_p5, %p927_p4 }
  0x1b   : > { %p931_p10 = por %p930_p8, %p929_p7 }
  0x1d   : > { %p932_p9 = pnand %p931_p10, %p925_p3 }
  0x1f   : > { %935 = shalt.err (!%p932_p9)
}
  0x20   : > { %s936_s20 = scalar_lea.vmem %s1113_s6, 768  ;;  %s1019_s25 = smov [#allocation2]  }
  0x21   : > { %p937_p0 = scmp.ne.s32.totalorder %s1113_s6, %s936_s20  ;;  %s941_s26 = sshll.u32 %s1019_s25, 4  ;;  %s942_s26 = int_to_ptr.vmem [resolvable:$false] %s941_s26 }
  0x22   : > { %s943_s27 = scalar_lea.vmem %s942_s26, 1536  ;;  %p944_p11 = scmp.lt.s32.totalorder %s1113_s6, %s942_s26 }
  0x23   : > { %p939_p2 = pnand %p937_p0, %p923_p1  ;;  %p945_p4 = scmp.lt.s32.totalorder %s943_s27, %s936_s20 }
  0x25   : > { %p940_p12 = pneg %p939_p2  ;;  %p946_p5 = por %p945_p4, %p944_p11 }
  0x27   : > { %p947_p7 = pnand %p946_p5, %p940_p12 }
  0x29   : > { %950 = shalt.err (!%p947_p7)
}
  0x2a   : > { %s1020_s28 = smov 128   ;;  %s1021_s29 = smov 8  }
  0x2b   : > { %875 = dma.hbm_to_vmem [thread:$0]  (!%p1109_p13), %s1107_s30, 768, %s1113_s6, %s1115_s7, %s1020_s28, %s1020_s28, %s1021_s29  }
  0x2c   : > { %p758_p9 = scmp.ge.s32.totalorder %s1017_s15, 1  ;;  %p157_p1 = scmp.lt.s32.totalorder %s1017_s15, 3 }
  0x2e   : > { %p158_p3 = pnand %p758_p9, %p157_p1 }
  0x2f   : > { %s1146_s5 = sand.u32 (!%p158_p3), 1, %s1009_s13  }
  0x30   : > { %161 = sbr.rel (%p158_p3) target bundleno = 516 (0x204), region = 32  ;;  %s164_s9 = scalar_lea.sflag (!%p158_p3), [#allocation3], %s1146_s5 }
  0x31   : > { %s866_s8 = smul.u32 (!%p158_p3), 48, %s1146_s5 }
  0x33   : > { %s167_s10 = scalar_lea.vmem (!%p158_p3), [#allocation2], %s866_s8 }
  0x37   : > { %996 = dma.done.wait (%p1087_p6), %s164_s9, 768  }
  0x38   : > { %998 = vsyncadd (%p1087_p6), %s164_s9, 4294966528  ;;  %vm197_vm0 = vcmask 130048   ;;  %v193_v0 = vld [vmem:[%s1227_s1] sm:$0xff]  ;;  %v194_v1 = vld [vmem:[%s1227_s1 + $0x8] sm:$0xff]  ;;  %v1022_v9 = vmov 0.0|0.0   ;;  %vm1023_vm1 = vmmov 0  }
  0x39   : > { %v195_v2 = vld [vmem:[%s167_s10] sm:$0xff]  ;;  %v844_v3 = vpack.c.bf16 %v194_v1, %v193_v0  ;;  %v196_v4 = vld [vmem:[%s167_s10 + $0x8] sm:$0xff]  ;;  %v762_v5 = vld [vmem:[%s167_s10 + $0x10] sm:$0xff]  ;;  %848 = vmatprep.subr.bf16.mxu1 %v1022_v9  ;;  %v1024_v10 = vmov 0.0   ;;  %s867_s17 = smul.u32 24, %s1146_s5  ;;  %vm352_vm2 = vcmask 64512  }
  0x3a   : > { %806 = vmatprep.mubr.msk.f32.mxu0 %vm197_vm0, %v195_v2  ;;  %v763_v6 = vld [vmem:[%s167_s10 + $0x18] sm:$0xff]  ;;  %v768_v7 = vld [vmem:[%s167_s10 + $0x20] sm:$0xff]  ;;  %v769_v8 = vld [vmem:[%s167_s10 + $0x28] sm:$0xff]  ;;  %813 = vmatprep.mubr.msk.f32.mxu1 %vm1023_vm1, %v1024_v10  ;;  %s779_s25 = smul.u32 384, %s1069_s16  ;;  %s667_s29 = scalar_lea.sflag [#allocation4], %s1146_s5 }
  0x3b   : > { %845 = vmatprep.subr.bf16.mxu0 %v844_v3  ;;  %v192_v15 = vld [vmem:[%s1226_s0] sm:$0xff]  ;;  %s189_s19 = scalar_lea.vmem [#allocation5], %s867_s17  ;;  %p1235_p11 = scmp.ne.s32.totalorder %s1232_s23, 0 }
  0x3c   : > { %847 = vmatpush3.bf16.msra.mxu0 %v844_v3  ;;  %s680_s20 = sshll.u32 %s189_s19, 4  ;;  %s1182_s28 = scalar_lea.hbm %s1229_s3, %s779_s25  ;;  %s1177_s20 = int_to_ptr.vmem [resolvable:$true] %s680_s20 }
  0x3d   : > { %852 = vmatprep.subr.bf16.mxu0 %v844_v3  ;;  %s951_s8 = scalar_lea.vmem %s1177_s20, 384  ;;  %s1025_s16 = smov [#allocation5]  }
  0x3e   : > { %p952_p6 = scmp.ne.s32.totalorder %s1177_s20, %s951_s8  ;;  %s955_s9 = sshll.u32 %s1025_s16, 4  ;;  %s956_s9 = int_to_ptr.vmem [resolvable:$false] %s955_s9 }
  0x3f   : > { %807 = vmatmul.mubr.msk.f32.vlgmr.msra.gmra.mrb[0].mxu0 %vm197_vm0, %v196_v4  ;;  %s957_s10 = scalar_lea.vmem %s956_s9, 768  ;;  %p958_p8 = scmp.lt.s32.totalorder %s1177_s20, %s956_s9 }
  0x40   : > { %854 = vmatpush3.bf16.msra.mxu0 %v844_v3  ;;  %820 = vmatprep.mubr.msk.f32.mxu0 %vm197_vm0, %v762_v5  ;;  %p953_p12 = pnand %p952_p6, %p1235_p11  ;;  %p959_p10 = scmp.lt.s32.totalorder %s957_s10, %s951_s8 }
  0x41   : > { %859 = vmatprep.subr.bf16.mxu0 %v844_v3 }
  0x42   : > { %p954_p13 = pneg %p953_p12  ;;  %p960_p0 = por %p959_p10, %p958_p8 }
  0x43   : > { %821 = vmatmul.mubr.msk.f32.vlgmr.msra.gmra.mrb[2].mxu0 %vm197_vm0, %v763_v6 }
  0x44   : > { %861 = vmatpush3.bf16.msra.mxu0 %v844_v3  ;;  %834 = vmatprep.mubr.msk.f32.mxu0 %vm197_vm0, %v768_v7  ;;  %p961_p2 = pnand %p960_p0, %p954_p13 }
  0x47   : > { %835 = vmatmul.mubr.msk.f32.vlgmr.msra.gmra.mrb[4].mxu0 %vm197_vm0, %v769_v8 }
 0x112   : > { %v808_v11 = vpop.f32.mrb[0].mxu0 }
 0x113   : > { %v270_v12 = vpop.f32.mrb[1].mxu0 }
 0x114   : > { %v849_v13 = vpack.c.bf16 %v808_v11, %v270_v12 }
 0x116   : > { %850 = vmatpush3.bf16.msra.mxu1 %v849_v13  ;;  %v822_v14 = vpop.f32.mrb[2].mxu0 }
 0x117   : > { %v429_v16 = vpop.f32.mrb[3].mxu0  ;;  %855 = vmatprep.subr.bf16.mxu1 %v1022_v9 }
 0x118   : > { %v856_v17 = vpack.c.bf16 %v822_v14, %v429_v16 }
 0x119   : > { %814 = vmatmul.mubr.msk.f32.vlgmr.msra.gmra.mrb[0].mxu1 %vm197_vm0, %v192_v15 }
 0x11a   : > { %857 = vmatpush3.bf16.msra.mxu1 %v856_v17  ;;  %v836_v18 = vpop.f32.mrb[4].mxu0  ;;  %827 = vmatprep.mubr.msk.f32.mxu1 %vm1023_vm1, %v1024_v10 }
 0x11b   : > { %v585_v19 = vpop.f32.mrb[5].mxu0  ;;  %862 = vmatprep.subr.bf16.mxu1 %v1022_v9 }
 0x11c   : > { %v863_v20 = vpack.c.bf16 %v836_v18, %v585_v19 }
 0x11d   : > { %828 = vmatmul.mubr.msk.f32.vlgmr.msra.gmra.mrb[2].mxu1 %vm197_vm0, %v192_v15 }
 0x11e   : > { %864 = vmatpush3.bf16.msra.mxu1 %v863_v20  ;;  %841 = vmatprep.mubr.msk.f32.mxu1 %vm1023_vm1, %v1024_v10 }
 0x121   : > { %842 = vmatmul.mubr.msk.f32.vlgmr.msra.gmra.mrb[4].mxu1 %vm197_vm0, %v192_v15 }
 0x1ec   : > { %v348_v21 = vpop.f32.mrb[0].mxu1 }
 0x1ed   : > { %353 = vst.msk [vmem:[%s189_s19] sm:$0xff] %vm352_vm2, %v348_v21  ;;  %v815_v22 = vpop.f32.mrb[1].mxu1 }
 0x1f0   : > { %v504_v23 = vpop.f32.mrb[2].mxu1 }
 0x1f1   : > { %767 = vst.msk [vmem:[%s189_s19 + $0x8] sm:$0xff] %vm352_vm2, %v504_v23  ;;  %v829_v24 = vpop.f32.mrb[3].mxu1 }
 0x1f4   : > { %v660_v25 = vpop.f32.mrb[4].mxu1 }
 0x1f5   : > { %773 = vst.msk [vmem:[%s189_s19 + $0x10] sm:$0xff] %vm352_vm2, %v660_v25  ;;  %v843_v26 = vpop.f32.mrb[5].mxu1 }
 0x1f6   : > { %964 = shalt.err (!%p961_p2)
}
 0x1f7   : > { %s965_s30 = scalar_lea.hbm %s1182_s28, 384  ;;  %s969_s7 = scalar_lea.hbm %s1229_s3, 768 }
 0x1f8   : > { %p966_p4 = scmp.ne.s32.totalorder %s1182_s28, %s965_s30  ;;  %p970_p9 = scmp.lt.u32.totalorder %s1182_s28, %s1229_s3 }
 0x1f9   : > { %p971_p1 = scmp.lt.u32.totalorder %s969_s7, %s965_s30  ;;  %p973_p6 = scmp.lt.u32.totalorder %s965_s30, %s1182_s28 }
 0x1fa   : > { %p967_p5 = pnand %p966_p4, %p1235_p11 }
 0x1fb   : > { %p972_p3 = por %p971_p1, %p970_p9 }
 0x1fc   : > { %p968_p7 = pneg %p967_p5 }
 0x1fd   : > { %p974_p12 = por %p973_p6, %p972_p3 }
 0x1ff   : > { %p975_p13 = pnand %p974_p12, %p968_p7 }
 0x201   : > { %978 = shalt.err (!%p975_p13)
}
 0x202   : > { %s1026_s17 = smov 128   ;;  %s1027_s19 = smov 8  }
 0x203   : > { %870 = dma.vmem_to_hbm [thread:$0]  (%p1235_p11), %s1177_s20, 384, %s1182_s28, %s667_s29, %s1026_s17, %s1026_s17, %s1027_s19  }
 0x204 PF: > { %s695_s25 = sand.u32 1, %s1005_s12   ;;  %p1236_p8 = scmp.ne.s32.totalorder %s1233_s24, 0 }
 0x205   : > { %p1237_p10 = scmp.ge.s32.totalorder %s1017_s15, 2  ;;  %s696_s26 = scalar_lea.sflag [#allocation4], %s695_s25 }
 0x207   : > { %p877_p0 = pnand %p1237_p10, %p1236_p8 }
 0x209   : > { %1000 = dma.done.wait (!%p877_p0), %s696_s26, 384  }
 0x20a   : > { %1002 = vsyncadd (!%p877_p0), %s696_s26, 4294966912  ;;  %p16_p2 = scmp.ge.s32.totalorder %s1073_s18, 4   ;;  %s1238_s12 = smov %s1009_s13 }
 0x20b   : > { %s1239_s13 = smov %s1013_s14  ;;  %s1240_s14 = smov %s1085_s21 }
 0x20c   : > { %s1241_s15 = smov %s1073_s18  ;;  %18 = sbr.rel (!%p16_p2) target bundleno = 5 (0x5), region = 81 }
 0x213   :  { %701 = vsyncpa [#allocation3], 1 }
 0x214   :  { %703 = vsyncpa [#allocation3 + $0x1], 1 }
 0x215   :  { %704 = vsyncpa [#allocation4], 1 }
 0x216   :  { %706 = vsyncpa [#allocation4 + $0x1], 1 }

</bundles_post_ra>
